<compile_context>
chip_gen: v7x
topology: tpu7x:2x2x1
jax: 0.10.0
libtpu: 0.0.40
codegen_flags: <defaults>
</compile_context>

<pallas_src>
import functools

import jax
import jax.numpy as jnp
from jax.experimental import pallas as pl
from jax.experimental.pallas import tpu as pltpu


# ----------------------- fused GeM kernel -----------------------------------

def _gem_kernel(p_ref, x_ref, o_ref, acc_ref, *, inv_hw, eps):
    # p_ref  : SMEM [1]            learnable GeM exponent
    # x_ref  : VMEM [1, TC, THW]   channels on sublanes, H*W on lanes
    # o_ref  : VMEM [1, TC, 1]     per-channel pooled result
    # acc_ref: VMEM [TC, 1]        f32 partial sums across the HW grid axis
    hw_i = pl.program_id(2)

    @pl.when(hw_i == 0)
    def _():
        acc_ref[...] = jnp.zeros_like(acc_ref)

    p = p_ref[0]
    x = x_ref[0].astype(jnp.float32)                       # [TC, THW]
    xc = jnp.maximum(x, eps)                               # clamp(min=eps)  (> 0)
    xp = jnp.exp(p * jnp.log(xc))                          # x ** p          (EUP)
    acc_ref[...] += jnp.sum(xp, axis=-1, keepdims=True)    # cross-lane reduce (XLU)

    @pl.when(hw_i == pl.num_programs(2) - 1)
    def _():
        mean = acc_ref[...] * inv_hw                       # avg_pool2d over (H, W)
        y = jnp.exp(jnp.log(mean) / p)                     # mean ** (1/p)
        o_ref[0] = y.astype(o_ref.dtype)


# ----------------------- tiling heuristics -----------------------------------

def _choose_hw_tile(hw):
    """Exact divisor of HW, a multiple of 128 when possible, giving >= 2 steps."""
    if hw % 128 != 0:
        return hw                      # full extent (block dim == array dim is legal)
    for cand in (2048, 1024, 512, 256, 128):
        if hw % cand == 0 and hw // cand >= 2:
            return cand
    return hw


def _choose_c_tile(c, b):
    """Exact divisor of C, multiple of 8 (sublanes); keep >= 2 parallel steps if B==1."""
    if c % 8 != 0:
        return c                       # full extent (block dim == array dim is legal)
    max_tile = 256
    if b == 1 and c >= 16:
        max_tile = min(max_tile, c // 2)   # give the two v7x TCs >= 2 parallel steps
    for cand in (256, 128, 64, 32, 16, 8):
        if cand <= max_tile and c % cand == 0:
            return cand
    return c


# ----------------------- wrapper ---------------------------------------------

def gem_pallas(x_nchw, p, eps=1e-6):
    """GeM pooling.  x_nchw: [B, C, H, W], p: [1] learnable scalar -> [B, C, 1, 1]."""
    B, C, H, W = x_nchw.shape
    HW = H * W

    # Free reshape only (collapses contiguous H, W); no transpose, no padding.
    x = x_nchw.reshape(B, C, HW)

    tc = _choose_c_tile(C, B)
    thw = _choose_hw_tile(HW)
    n_c = C // tc
    n_hw = HW // thw

    p_arr = jnp.reshape(p, (1,)).astype(jnp.float32)

    out = pl.pallas_call(
        functools.partial(_gem_kernel, inv_hw=1.0 / float(HW), eps=float(eps)),
        out_shape=jax.ShapeDtypeStruct((B, C, 1), x_nchw.dtype),
        grid_spec=pltpu.PrefetchScalarGridSpec(
            num_scalar_prefetch=0,
            grid=(B, n_c, n_hw),
            in_specs=[
                pl.BlockSpec(memory_space=pltpu.MemorySpace.SMEM),           # p
                pl.BlockSpec((1, tc, thw), lambda b, c, h: (b, c, h)),        # x tile
            ],
            out_specs=pl.BlockSpec((1, tc, 1), lambda b, c, h: (b, c, 0)),
            scratch_shapes=[pltpu.VMEM((tc, 1), jnp.float32)],
        ),
        compiler_params=pltpu.CompilerParams(
            dimension_semantics=("parallel", "parallel", "arbitrary")),
    )(p_arr, x)

    return out.reshape(B, C, 1, 1)


# ----------------------- pure-JAX reference ----------------------------------

def gem_reference(x, p, eps=1e-6):
    pv = jnp.reshape(p, ()).astype(jnp.float32)
    xf = x.astype(jnp.float32)
    xp = jnp.maximum(xf, eps) ** pv
    m = jnp.mean(xp, axis=(2, 3), keepdims=True)
    return (m ** (1.0 / pv)).astype(x.dtype)


if __name__ == "__main__":
    key = jax.random.PRNGKey(0)
    k1, k2 = jax.random.split(key)

    p = jnp.ones((1,), jnp.float32) * 3.0          # GeM default p = 3
    fwd = jax.jit(functools.partial(gem_pallas, eps=1e-6))

    # Case 1: f32, C not a multiple of 8 (full-channel block), HW tiled into 2 steps.
    B, C, H, W = 2, 4, 16, 16
    x = jax.random.normal(k1, (B, C, H, W), jnp.float32)
    out = jax.block_until_ready(fwd(x, p))
    ref = gem_reference(x, p, eps=1e-6)
    assert out.shape == (B, C, 1, 1), out.shape
    assert bool(jnp.all(jnp.isfinite(out)))
    assert bool(jnp.allclose(out, ref, rtol=1e-4, atol=1e-5)), \
        float(jnp.max(jnp.abs(out - ref)))

    # Case 2: bf16 activations, channel-tiled path, HW not a multiple of 128.
    B2, C2, H2, W2 = 1, 32, 8, 8
    x2 = jax.random.normal(k2, (B2, C2, H2, W2), jnp.float32).astype(jnp.bfloat16)
    out2 = jax.block_until_ready(fwd(x2, p))
    ref2 = gem_reference(x2, p, eps=1e-6)
    assert out2.shape == (B2, C2, 1, 1), out2.shape
    assert out2.dtype == jnp.bfloat16
    assert bool(jnp.allclose(out2.astype(jnp.float32), ref2.astype(jnp.float32),
                             rtol=2e-2, atol=2e-2))

    print("KERNEL_OK")
</pallas_src>

<mosaic_0001>
module attributes {stable_mosaic.version = 11 : i64} {
  func.func @_gem_kernel(%arg0: i32, %arg1: i32, %arg2: i32, %arg3: memref<1xf32, #tpu.memory_space<smem>>, %arg4: memref<1x4x128xf32, #tpu.memory_space<vmem>>, %arg5: memref<1x4x1xf32, #tpu.memory_space<vmem>>, %arg6: memref<4x1xf32, #tpu.memory_space<vmem>>) attributes {dimension_semantics = [#tpu.dimension_semantics<parallel>, #tpu.dimension_semantics<parallel>, #tpu.dimension_semantics<arbitrary>], iteration_bounds = array<i64: 2, 1, 2>, scalar_prefetch = 0 : i64, scratch_operands = 1 : i64, tpu.core_type = #tpu.core_type<tc>, window_params = [{transform_indices = @transform_0, window_bounds = array<i64: 1>}, {transform_indices = @transform_1, window_bounds = array<i64: 1, 4, 128>}, {transform_indices = @transform_2, window_bounds = array<i64: 1, 4, 1>}]} {
    %c0_i32 = arith.constant 0 : i32
    %0 = arith.cmpi eq, %arg2, %c0_i32 : i32
    %1 = arith.extui %0 : i1 to i32
    %c0_i32_0 = arith.constant 0 : i32
    %2 = arith.cmpi ne, %1, %c0_i32_0 : i32
    scf.if %2 {
      %cst_10 = arith.constant 0.000000e+00 : f32
      %20 = vector.broadcast %cst_10 : f32 to vector<4x1xf32>
      %c0_11 = arith.constant 0 : index
      %c0_12 = arith.constant 0 : index
      %21 = vector.load %arg6[%c0_11, %c0_12] : memref<4x1xf32, #tpu.memory_space<vmem>>, vector<4x1xf32>
      tpu.vector_store %arg6[%c0_11, %c0_12], %20 {strides = array<i32>} : memref<4x1xf32, #tpu.memory_space<vmem>>, vector<4x1xf32>,
    } else {
    }
    %c0 = arith.constant 0 : index
    %3 = memref.load %arg3[%c0] : memref<1xf32, #tpu.memory_space<smem>>
    %c0_1 = arith.constant 0 : index
    %c0_2 = arith.constant 0 : index
    %c0_3 = arith.constant 0 : index
    %4 = vector.load %arg4[%c0_1, %c0_2, %c0_3] : memref<1x4x128xf32, #tpu.memory_space<vmem>>, vector<1x4x128xf32>
    %5 = vector.shape_cast %4 : vector<1x4x128xf32> to vector<4x128xf32>
    %cst = arith.constant 9.99999997E-7 : f32
    %6 = vector.broadcast %cst : f32 to vector<4x128xf32>
    %7 = arith.maximumf %5, %6 : vector<4x128xf32>
    %8 = math.log %7 : vector<4x128xf32>
    %9 = vector.broadcast %3 : f32 to vector<4x128xf32>
    %10 = arith.mulf %9, %8 : vector<4x128xf32>
    %11 = math.exp %10 : vector<4x128xf32>
    %c0_4 = arith.constant 0 : index
    %c0_5 = arith.constant 0 : index
    %12 = vector.load %arg6[%c0_4, %c0_5] : memref<4x1xf32, #tpu.memory_space<vmem>>, vector<4x1xf32>
    %cst_6 = arith.constant dense<0.000000e+00> : vector<4xf32>
    %13 = vector.multi_reduction <add>, %11, %cst_6 [1] : vector<4x128xf32> to vector<4xf32>
    %14 = vector.shape_cast %13 : vector<4xf32> to vector<4x1xf32>
    %15 = arith.addf %12, %14 : vector<4x1xf32>
    %c0_7 = arith.constant 0 : index
    %c0_8 = arith.constant 0 : index
    %16 = vector.load %arg6[%c0_7, %c0_8] : memref<4x1xf32, #tpu.memory_space<vmem>>, vector<4x1xf32>
    tpu.vector_store %arg6[%c0_7, %c0_8], %15 {strides = array<i32>} : memref<4x1xf32, #tpu.memory_space<vmem>>, vector<4x1xf32>,
    %c1_i32 = arith.constant 1 : i32
    %17 = arith.cmpi eq, %arg2, %c1_i32 : i32
    %18 = arith.extui %17 : i1 to i32
    %c0_i32_9 = arith.constant 0 : i32
    %19 = arith.cmpi ne, %18, %c0_i32_9 : i32
    scf.if %19 {
      %c0_10 = arith.constant 0 : index
      %c0_11 = arith.constant 0 : index
      %20 = vector.load %arg6[%c0_10, %c0_11] : memref<4x1xf32, #tpu.memory_space<vmem>>, vector<4x1xf32>
      %cst_12 = arith.constant 3.906250e-03 : f32
      %21 = vector.broadcast %cst_12 : f32 to vector<4x1xf32>
      %22 = arith.mulf %20, %21 : vector<4x1xf32>
      %23 = math.log %22 : vector<4x1xf32>
      %24 = vector.broadcast %3 : f32 to vector<4x1xf32>
      %25 = arith.divf %23, %24 : vector<4x1xf32>
      %26 = math.exp %25 : vector<4x1xf32>
      %c0_13 = arith.constant 0 : index
      %c0_14 = arith.constant 0 : index
      %c0_15 = arith.constant 0 : index
      %27 = vector.load %arg5[%c0_13, %c0_14, %c0_15] : memref<1x4x1xf32, #tpu.memory_space<vmem>>, vector<1x4x1xf32>
      %28 = vector.shape_cast %27 : vector<1x4x1xf32> to vector<4x1xf32>
      %29 = vector.shape_cast %26 : vector<4x1xf32> to vector<1x4x1xf32>
      tpu.vector_store %arg5[%c0_13, %c0_14, %c0_15], %29 {strides = array<i32>} : memref<1x4x1xf32, #tpu.memory_space<vmem>>, vector<1x4x1xf32>,
    } else {
    }
    return
  }
  func.func @transform_0(%arg0: i32, %arg1: i32, %arg2: i32) -> i32 {
    %c0_i32 = arith.constant 0 : i32
    %c0_i32_0 = arith.constant 0 : i32
    return %c0_i32 : i32
  }
  func.func @transform_1(%arg0: i32, %arg1: i32, %arg2: i32) -> (i32, i32, i32) {
    %c0_i32 = arith.constant 0 : i32
    return %arg0, %arg1, %arg2 : i32, i32, i32
  }
  func.func @transform_2(%arg0: i32, %arg1: i32, %arg2: i32) -> (i32, i32, i32) {
    %c0_i32 = arith.constant 0 : i32
    %c0_i32_0 = arith.constant 0 : i32
    return %arg0, %arg1, %c0_i32 : i32, i32, i32
  }
}

</mosaic_0001>

<bundles_post_ra>
// kernel: gem_pallas.1
= control target key start
LH: loop header
LB: loop body
LE: loop exit
PB: predicated region body
PF: predicated region fallthrough
CT: control target
= control target key end

     0   :  { %s442_s11 = smov 0   ;;  %s444_s12 = smov 0   ;;  %s504_s0 = inlined_call_operand.<no memory space> [shape: f32[1], index: 0, kind: input, shape index: {}]   ;;  %s505_s1 = inlined_call_operand.vmem [shape: f32[2,4,256], index: 1, kind: input, shape index: {}]   ;;  %s506_s2 = inlined_call_operand.vmem [shape: f32[2,4,1], index: 2, kind: output, shape index: {}]  }
   0x1   :  { %7 = sst [smem:[#allocation3]] %s504_s0  ;;  %s446_s13 = smov 0  }
   0x2   :  { %s448_s14 = smov 0   ;;  %s450_s15 = smov 0  }
   0x3 LB: > { %s25_s0 = sadd.s32 1, %s413_s13  ;;  %s32_s16 = sadd.s32 1, %s417_s14  ;;  %s421_s15 = sphi %s450_s15, %s13_s15   ;;  %s417_s14 = sphi %s448_s14, %s510_s14   ;;  %s413_s13 = sphi %s446_s13, %s509_s13   ;;  %s409_s12 = sphi %s444_s12, %s508_s12   ;;  %s405_s11 = sphi %s442_s11, %s507_s11  }
   0x4   : > { %p26_p0 = scmp.ge.s32.totalorder %s25_s0, 2  ;;  %p324_p1 = scmp.ge.s32.totalorder %s421_s15, 1 }
   0x5   : > { %p145_p2 = scmp.lt.s32.totalorder %s421_s15, 5 }
   0x6   : > { %s512_s0 = smov (%p26_p0, %s25_s0), 0  ;;  %s514_s16 = smov (!%p26_p0, %s32_s16), %s417_s14 }
   0x7   : > { %p146_p3 = pnand %p324_p1, %p145_p2  ;;  %p34_p4 = scmp.ge.s32.totalorder %s514_s16, 2 }
   0x8   : > { %p176_p5 = scmp.lt.s32.totalorder (!%p146_p3), %s409_s12, 1  ;;  %p180_p6 = scmp.lt.s32.totalorder (!%p146_p3), %s405_s11, 1 }
   0x9   : > { %s516_s16 = smov (%p34_p4, %s514_s16), 0  ;;  %149 = sbr.rel (%p146_p3) target bundleno = 238 (0xee), region = 28 }
   0xa   : > { %p328_p7 = scmp.ne.s32.totalorder (!%p146_p3), %s405_s11, 0 }
  0x10   : > { %s518_s12 = smov (!%p176_p5, %s409_s12), 1  ;;  %198 = sbr.rel (%p328_p7) target bundleno = 23 (0x17), region = 32 }
  0x11   : > { %s181_s17 = scalar_select %p180_p6, %s405_s11, 1 }
  0x12   : > { %s325_s18 = sshll.u32 %s518_s12, 1  ;;  %s327_s19 = sshll.u32 %s518_s12, 2  ;;  %vm199_vm0 = vcmask (!%p328_p7), 3072   ;;  %v423_v0 = vmov (!%p328_p7), 0.0  }
  0x13   : > { %s185_s20 = sadd.s32 %s325_s18, %s181_s17  ;;  %s479_s23 = scalar_lea.vmem %s506_s2, %s327_s19  ;;  %200 = vst.msk [vmem:[#allocation2] sm:$0xf] (!%p328_p7), %vm199_vm0, %v423_v0 }
  0x14   : > { %s326_s24 = sshll.u32 %s185_s20, 2 }
  0x15   : > { %s187_s27 = scalar_lea.vmem %s505_s1, %s326_s24 }
  0x17 PF: > { %v202_v1 = vld [vmem:[%s187_s27] sm:$0xf]  ;;  %s201_s28 = sld [smem:[#allocation3]]  ;;  %vm211_vm1 = vcmask 1043456   ;;  %vm216_vm2 = vcmask 3072   ;;  %p329_p8 = scmp.ne.s32.totalorder %s405_s11, 1 }
  0x18   : > { %v203_v2 = vmax.f32 %v202_v1, 1e-06 }
  0x1a   : > { %373 = vlog2.f32 %v203_v2  ;;  %v210_v10 = vld [vmem:[#allocation2] sm:$0xf] }
  0x1d   : > { %v206_v4 = vstv %s201_s28 }
  0x24   : > { %v374_v3 = vpop.eup %373 }
  0x25   : > { %v205_v5 = vmul.f32 0.6931472, %v374_v3 }
  0x27   : > { %v207_v6 = vmul.f32 %v206_v4, %v205_v5 }
  0x29   : > { %v208_v7 = vmul.f32 1.442695, %v207_v6 }
  0x2b   : > { %375 = vpow2.f32 %v208_v7 }
  0x2c   : > { %377 = vrcp.f32 (!%p329_p8), %v206_v4 }
  0x35   : > { %v376_v8 = vpop.eup %375 }
  0x36   : > { %v212_v9 = vsel %vm211_vm1, %v376_v8, 0.0  ;;  %v378_v15 = vpop.eup (!%p329_p8), %377 }
  0x37   : > { %213 = vadd.xlane.f32.xlu0 %v212_v9 }
  0xc1   : > { %221 = sbr.rel (%p329_p8) target bundleno = 238 (0xee), region = 36 }
  0xc4   : > { %v214_v11 = vpop.xlane.xlu0 %213 }
  0xc5   : > { %v215_v12 = vadd.f32 %v214_v11, %v210_v10 }
  0xc7   : > { %217 = vst.msk [vmem:[#allocation2] sm:$0xf] %vm216_vm2, %v215_v12 }
  0xce   : > { %v222_v13 = vld [vmem:[#allocation2] sm:$0xf] }
  0xcf   : > { %v223_v14 = vmul.f32 0.00390625, %v222_v13 }
  0xd1   : > { %379 = vlog2.f32 %v223_v14 }
  0xdb   : > { %v380_v16 = vpop.eup %379 }
  0xdc   : > { %v225_v17 = vmul.f32 0.6931472, %v380_v16 }
  0xde   : > { %v227_v18 = vmul.f32 %v378_v15, %v225_v17 }
  0xe0   : > { %v228_v19 = vmul.f32 1.442695, %v227_v18 }
  0xe2   : > { %381 = vpow2.f32 %v228_v19 }
  0xec   : > { %v382_v20 = vpop.eup %381 }
  0xed   : > { %230 = vst.msk [vmem:[%s479_s23] sm:$0xf] %vm216_vm2, %v382_v20 }
  0xee PF: > { %s13_s15 = sadd.s32 1, %s421_s15   ;;  %s507_s11 = smov %s413_s13 }
  0xef   : > { %p10_p9 = scmp.ge.s32.totalorder %s13_s15, 6   ;;  %s508_s12 = smov %s417_s14 }
  0xf0   : > { %s509_s13 = smov %s512_s0  ;;  %s510_s14 = smov %s516_s16 }
  0xf1   :  { %12 = sbr.rel (!%p10_p9) target bundleno = 3 (0x3), region = 66 }

</bundles_post_ra>
